<compile_context>
chip_gen: v7x
topology: tpu7x:2x2x1
jax: 0.10.0
libtpu: 0.0.40
codegen_flags: <defaults>
</compile_context>

<pallas_src>
import functools

import jax
import jax.numpy as jnp
from jax.experimental import pallas as pl
from jax.experimental.pallas import tpu as pltpu


def _round_up(x, m):
    return ((x + m - 1) // m) * m


def _fusion_kernel(q_ref, a_ref, tm_ref, o_ref, *, emb_dim):
    # q_ref : (TM, D)   float32 row tile of flattened ques_emb
    # a_ref : (TM, 1)   int32   row tile of flattened pad_answer
    # tm_ref: (2, 2D)   float32 transform matrix (grid-invariant)
    # o_ref : (TM, 2D)  float32 output row tile
    q = q_ref[...]                              # (TM, D)
    ans = a_ref[...]                            # (TM, 1) int32
    tm = tm_ref[...]                            # (2, 2D)

    tm0 = tm[0:1, :]                            # (1, 2D)
    tm1 = tm[1:2, :]                            # (1, 2D)

    # Per-lane VPU select replaces the embedding lookup (valid for indices in {0,1}).
    ans_emb = jnp.where(ans == 1, tm1, tm0)     # (TM, 2D)

    # cat([q, q], -1) * ans_emb, written as one lane-dense full-width store.
    qq = jnp.concatenate([q, q], axis=-1)       # (TM, 2D)
    o_ref[...] = qq * ans_emb


def fusion_module_forward(ques_emb, pad_answer, transform_matrix, *, row_tile=1024):
    """ques_emb: (..., D) float, pad_answer: (...) int, transform_matrix: (2, 2D)."""
    D = ques_emb.shape[-1]
    assert transform_matrix.shape == (2, 2 * D)
    batch_shape = ques_emb.shape[:-1]

    q = ques_emb.reshape(-1, D).astype(jnp.float32)
    a = pad_answer.reshape(-1).astype(jnp.int32)[:, None]   # (N, 1)
    N = q.shape[0]

    # Row tile: large, sublane-aligned, but bounded so double-buffered
    # in (TM*D) + out (TM*2D) f32 buffers (~24*TM*D bytes) stay under ~16 MiB.
    vmem_budget = 16 * 1024 * 1024
    max_tm = max(8, (vmem_budget // (24 * max(D, 1))) // 8 * 8)
    TM = min(_round_up(row_tile, 8), _round_up(N, 8), max_tm)

    N_pad = _round_up(N, TM)
    if N_pad != N:
        q = jnp.pad(q, ((0, N_pad - N), (0, 0)))
        a = jnp.pad(a, ((0, N_pad - N), (0, 0)))

    grid = (N_pad // TM,)

    out = pl.pallas_call(
        functools.partial(_fusion_kernel, emb_dim=D),
        out_shape=jax.ShapeDtypeStruct((N_pad, 2 * D), jnp.float32),
        grid_spec=pltpu.PrefetchScalarGridSpec(
            num_scalar_prefetch=0,
            grid=grid,
            in_specs=[
                pl.BlockSpec((TM, D), lambda i: (i, 0)),        # ques_emb row tile
                pl.BlockSpec((TM, 1), lambda i: (i, 0)),        # pad_answer row tile
                pl.BlockSpec((2, 2 * D), lambda i: (0, 0)),     # full transform matrix
            ],
            out_specs=pl.BlockSpec((TM, 2 * D), lambda i: (i, 0)),
        ),
        compiler_params=pltpu.CompilerParams(
            dimension_semantics=("parallel",),
        ),
    )(q, a, transform_matrix.astype(jnp.float32))

    out = out[:N]
    return out.reshape(*batch_shape, 2 * D)


def make_transform_matrix(emb_dim):
    # Deterministic init, exactly as in Fusion_Module.__init__
    tm = jnp.zeros((2, 2 * emb_dim), dtype=jnp.float32)
    tm = tm.at[0, emb_dim:].set(1.0)
    tm = tm.at[1, :emb_dim].set(1.0)
    return tm


def reference_forward(ques_emb, pad_answer, transform_matrix):
    qq = jnp.concatenate([ques_emb, ques_emb], axis=-1)
    ans_emb = jnp.take(transform_matrix, pad_answer, axis=0)
    return qq * ans_emb


if __name__ == "__main__":
    B, S, D = 2, 8, 64
    key = jax.random.PRNGKey(0)
    k1, k2 = jax.random.split(key)

    ques_emb = jax.random.normal(k1, (B, S, D), dtype=jnp.float32)
    pad_answer = jax.random.randint(k2, (B, S), 0, 2, dtype=jnp.int32)
    transform_matrix = make_transform_matrix(D)

    out = fusion_module_forward(ques_emb, pad_answer, transform_matrix)
    out = jax.block_until_ready(out)

    ref = reference_forward(ques_emb, pad_answer, transform_matrix)
    assert out.shape == (B, S, 2 * D)
    assert jnp.allclose(out, ref, atol=1e-6, rtol=1e-6), "mismatch vs reference"

    print("KERNEL_OK")
</pallas_src>

<mosaic_0001>
module attributes {stable_mosaic.version = 11 : i64} {
  func.func @_fusion_kernel(%arg0: i32, %arg1: memref<16x64xf32, #tpu.memory_space<vmem>>, %arg2: memref<16x1xi32, #tpu.memory_space<vmem>>, %arg3: memref<2x128xf32, #tpu.memory_space<vmem>>, %arg4: memref<16x128xf32, #tpu.memory_space<vmem>>) attributes {dimension_semantics = [#tpu.dimension_semantics<parallel>], iteration_bounds = array<i64: 1>, scalar_prefetch = 0 : i64, scratch_operands = 0 : i64, tpu.core_type = #tpu.core_type<tc>, window_params = [{transform_indices = @transform_0, window_bounds = array<i64: 16, 64>}, {transform_indices = @transform_1, window_bounds = array<i64: 16, 1>}, {pipeline_mode = #tpu.pipeline_mode<synchronous>, transform_indices = @transform_2, window_bounds = array<i64: 2, 128>}, {transform_indices = @transform_3, window_bounds = array<i64: 16, 128>}]} {
    %c0 = arith.constant 0 : index
    %c0_0 = arith.constant 0 : index
    %0 = vector.load %arg1[%c0, %c0_0] : memref<16x64xf32, #tpu.memory_space<vmem>>, vector<16x64xf32>
    %c0_1 = arith.constant 0 : index
    %c0_2 = arith.constant 0 : index
    %1 = vector.load %arg2[%c0_1, %c0_2] : memref<16x1xi32, #tpu.memory_space<vmem>>, vector<16x1xi32>
    %c0_3 = arith.constant 0 : index
    %c0_4 = arith.constant 0 : index
    %2 = vector.load %arg3[%c0_3, %c0_4] : memref<2x128xf32, #tpu.memory_space<vmem>>, vector<2x128xf32>
    %3 = vector.extract_strided_slice %2 {offsets = [0, 0], sizes = [1, 128], strides = [1, 1]} : vector<2x128xf32> to vector<1x128xf32>
    %4 = vector.extract_strided_slice %2 {offsets = [1, 0], sizes = [1, 128], strides = [1, 1]} : vector<2x128xf32> to vector<1x128xf32>
    %c1_i32 = arith.constant 1 : i32
    %5 = vector.broadcast %c1_i32 : i32 to vector<16x1xi32>
    %6 = arith.cmpi eq, %1, %5 : vector<16x1xi32>
    %7 = vector.shape_cast %6 : vector<16x1xi1> to vector<16x1xi1>
    %8 = vector.broadcast %7 : vector<16x1xi1> to vector<16x128xi1>
    %9 = vector.shape_cast %4 : vector<1x128xf32> to vector<1x128xf32>
    %10 = vector.broadcast %9 : vector<1x128xf32> to vector<16x128xf32>
    %11 = vector.shape_cast %3 : vector<1x128xf32> to vector<1x128xf32>
    %12 = vector.broadcast %11 : vector<1x128xf32> to vector<16x128xf32>
    %13 = arith.select %8, %10, %12 : vector<16x128xi1>, vector<16x128xf32>
    %14 = tpu.concatenate %0, %0 in 1 : vector<16x64xf32>, vector<16x64xf32> -> vector<16x128xf32>
    %15 = arith.mulf %14, %13 : vector<16x128xf32>
    %c0_5 = arith.constant 0 : index
    %c0_6 = arith.constant 0 : index
    %16 = vector.load %arg4[%c0_5, %c0_6] : memref<16x128xf32, #tpu.memory_space<vmem>>, vector<16x128xf32>
    tpu.vector_store %arg4[%c0_5, %c0_6], %15 {strides = array<i32>} : memref<16x128xf32, #tpu.memory_space<vmem>>, vector<16x128xf32>,
    return
  }
  func.func @transform_0(%arg0: i32) -> (i32, i32) {
    %c0_i32 = arith.constant 0 : i32
    %c0_i32_0 = arith.constant 0 : i32
    return %arg0, %c0_i32 : i32, i32
  }
  func.func @transform_1(%arg0: i32) -> (i32, i32) {
    %c0_i32 = arith.constant 0 : i32
    %c0_i32_0 = arith.constant 0 : i32
    return %arg0, %c0_i32 : i32, i32
  }
  func.func @transform_2(%arg0: i32) -> (i32, i32) {
    %c0_i32 = arith.constant 0 : i32
    %c0_i32_0 = arith.constant 0 : i32
    %c0_i32_1 = arith.constant 0 : i32
    return %c0_i32, %c0_i32_0 : i32, i32
  }
  func.func @transform_3(%arg0: i32) -> (i32, i32) {
    %c0_i32 = arith.constant 0 : i32
    %c0_i32_0 = arith.constant 0 : i32
    return %arg0, %c0_i32 : i32, i32
  }
}

</mosaic_0001>

<bundles_post_ra>
// kernel: tpu_custom_call.1
= control target key start
LH: loop header
LB: loop body
LE: loop exit
PB: predicated region body
PF: predicated region fallthrough
CT: control target
= control target key end

     0   :  { %v103_v3 = vmov 0   ;;  %s104_s18 = smov 64   ;;  %s155_s0 = inlined_call_operand.vmem [shape: f32[16,64], index: 0, kind: input, shape index: {}]   ;;  %s156_s1 = inlined_call_operand.vmem [shape: s32[16,1], index: 1, kind: input, shape index: {}]   ;;  %s157_s2 = inlined_call_operand.vmem [shape: f32[2,128], index: 2, kind: input, shape index: {}]   ;;  %s158_s3 = inlined_call_operand.hbm [shape: f32[16,128], index: 3, kind: output, shape index: {}]  }
   0x1   :  { %v17_v0 = vld [vmem:[%s156_s1] sm:$0xff]  ;;  %v18_v1 = vld [vmem:[%s156_s1 + $0x8] sm:$0xff]  ;;  %78 = vset.pattern.permute.xlu0 %v103_v3 }
   0x2   :  { %v15_v2 = vld [vmem:[%s155_s0] sm:$0xff]  ;;  %vm20_vm0 = vcmp.eq.s32.totalorder %v17_v0, 1  ;;  %vm21_vm1 = vcmp.eq.s32.totalorder %v18_v1, 1  ;;  %v16_v5 = vld [vmem:[%s155_s0 + $0x8] sm:$0xff] }
   0x3   :  { %44 = vrot.lane.b32.xlu1 %v15_v2, %s104_s18  ;;  %v22_v4 = vsel %vm20_vm0, 1, %v103_v3 }
   0x4   :  { %8 = vsyncpa [#allocation3], 0  ;;  %25 = vperm.xlu0 %78, %v22_v4   ;;  %v23_v6 = vsel %vm21_vm1, 1, %v103_v3  ;;  %v32_v7 = vlaneseq  ;;  %v19_v11 = vld [vmem:[%s157_s2] sm:$0x3]  ;;  %vm50_vm2 = vcmask 523264  }
   0x5   :  { %s105_s0 = smov [#allocation2]  }
   0x6   :  { %v33_v8 = vshrl.u32 %v32_v7, 7  ;;  %s62_s22 = sshll.u32 %s105_s0, 4  ;;  %s63_s22 = int_to_ptr.vmem [resolvable:$true] %s62_s22 }
   0x7   :  { %46 = vrot.lane.b32.xlu1 %v16_v5, %s104_s18  ;;  %s79_s2 = scalar_lea.vmem %s63_s22, 256  ;;  %p84_p1 = scmp.lt.s32.totalorder %s63_s22, %s63_s22 }
   0x8   :  { %28 = vperm.xlu0 %78, %v23_v6   ;;  %v34_v9 = vsub.s32 1, %v33_v8  ;;  %v38_v10 = vsub.s32 0, %v33_v8  ;;  %p80_p0 = scmp.ne.s32.totalorder %s63_s22, %s79_s2  ;;  %p85_p2 = scmp.lt.s32.totalorder %s79_s2, %s79_s2 }
   0xa   :  { %v35_v13 = vrot.slane %v19_v11, %v34_v9  ;;  %v39_v14 = vrot.slane %v19_v11, %v38_v10  ;;  %p86_p3 = por %p85_p2, %p84_p1 }
   0xc   :  { %p87_p4 = pnand %p86_p3, %p80_p0 }
  0x75   :  { %v45_v12 = vpop.permute.xlu1 %44 }
  0x76   :  { %v51_v16 = vsel %vm50_vm2, %v15_v2, %v45_v12 }
  0x79   :  { %v47_v17 = vpop.permute.xlu1 %46 }
  0x7a   :  { %v52_v21 = vsel %vm50_vm2, %v16_v5, %v47_v17 }
  0x83   :  { %v26_v15 = vpop.permute.xlu0 %25 }
  0x84   :  { %vm30_vm3 = vcmp.eq.s32.totalorder %v26_v15, 1 }
  0x85   :  { %v40_v18 = vsel %vm30_vm3, %v35_v13, %v39_v14 }
  0x86   :  { %v53_v19 = vmul.f32 %v51_v16, %v40_v18 }
  0x87   :  { %v29_v20 = vpop.permute.xlu0 %28 }
  0x88   :  { %55 = vst [vmem:[#allocation2] sm:$0xff] %v53_v19  ;;  %vm31_vm4 = vcmp.eq.s32.totalorder %v29_v20, 1 }
  0x89   :  { %v41_v22 = vsel %vm31_vm4, %v35_v13, %v39_v14 }
  0x8a   :  { %v54_v23 = vmul.f32 %v52_v21, %v41_v22 }
  0x8c   :  { %56 = vst [vmem:[#allocation2 + $0x8] sm:$0xff] %v54_v23 }
  0x8d   :  { %90 = shalt.err (!%p87_p4)
}
  0x8e   :  { %s91_s25 = scalar_lea.hbm %s158_s3, 256 }
  0x8f   :  { %p92_p5 = scmp.ne.s32.totalorder %s158_s3, %s91_s25  ;;  %p95_p6 = scmp.lt.u32.totalorder %s91_s25, %s158_s3 }
  0x91   :  { %p97_p7 = pnand %p95_p6, %p92_p5 }
  0x93   :  { %100 = shalt.err (!%p97_p7)
}
  0x94   :  { %s106_s30 = smov 128   ;;  %s107_s4 = smov 8  }
  0x95   :  { %68 = dma.vmem_to_hbm [thread:$0]  %s63_s22, 256, %s158_s3, [#allocation3], %s106_s30, %s106_s30, %s107_s4  }
  0x96   :  { %101 = dma.done.wait [#allocation3], 256  }
  0x97   :  { %102 = vsyncadd [#allocation3], 4294967040 }
  0x98   :  { %72 = vsyncpa [#allocation3], 1 }

</bundles_post_ra>
